<compile_context>
chip_gen: v5e
topology: v5e:2x2
jax: 0.10.0
libtpu: 0.0.40
codegen_flags: <defaults>
</compile_context>

<pallas_src>
import jax
import jax.numpy as jnp
from jax.experimental import pallas as pl
from jax.experimental.pallas import tpu as pltpu

LANES = 128                 # vreg lane width (fast axis)
SUBLANES = 8                # f32 vreg sublane count -> (8, 128) output tile
MAX_BLOCK_ROWS = 4096       # 4096 x 128 f32 = 2 MiB per input block
MIN_SPLIT_BLOCK_ROWS = 2048 # when splitting for megacore, keep blocks >= 1 MiB


def _make_bpr_kernel(block_rows, grid, last_valid_rows):
    """Build the per-block kernel with all geometry baked in statically."""
    groups = block_rows // SUBLANES
    needs_mask = last_valid_rows < block_rows  # only a ragged last block masks

    def kernel(pos_ref, neg_ref, out_ref):
        # bf16 inputs are upcast here; f32 inputs pass through unchanged.
        diff = pos_ref[...].astype(jnp.float32) - neg_ref[...].astype(jnp.float32)
        losses = -jax.nn.sigmoid(diff)   # -sigmoid(pos - neg)

        def _store(vals):
            # (block_rows,128) -> (groups,8,128): splits the sublane-major dim
            # without crossing (8,128) tiles (free reshape); the axis-0 sum is
            # plain VALU adds; the store is one full unmasked (8,128) vreg.
            out_ref[...] = vals.reshape(groups, SUBLANES, LANES).sum(axis=0)

        if needs_mask:
            i = pl.program_id(0)

            # Interior blocks: pure load / sub / sigmoid / add.
            @pl.when(i < grid - 1)
            def _():
                _store(losses)

            # Last block: zero out the rows beyond the array before reducing
            # (the ragged region of the block holds unspecified VMEM data).
            @pl.when(i == grid - 1)
            def _():
                row = jax.lax.broadcasted_iota(jnp.int32, (block_rows, LANES), 0)
                _store(jnp.where(row < last_valid_rows, losses, jnp.float32(0.0)))
        else:
            _store(losses)

    return kernel


def bpr_loss(positive_score, negative_score, size_average=False, margin=0.0):
    """Pallas implementation of BPRLoss.forward.

    `margin` is unused by the reference forward (kept for signature parity).
    Inputs may be f32 or bf16 (bf16 halves HBM reads; math stays f32).
    """
    del margin
    pos = jnp.ravel(positive_score)   # squeeze + flatten (sum is layout-free)
    neg = jnp.ravel(negative_score)
    assert pos.shape == neg.shape
    n_valid = pos.shape[0]
    assert n_valid > 0, "BPRLoss on empty input"

    # Split into an (8*128)-aligned prefix (streamed through the kernel) and a
    # <=1023-element tail (reduced directly in JAX). For aligned inputs this is
    # completely copy-free (reshape only); no jnp.pad of the full arrays.
    kernel_rows = (n_valid // (SUBLANES * LANES)) * SUBLANES
    kernel_elems = kernel_rows * LANES
    tail_elems = n_valid - kernel_elems

    total = jnp.zeros((), jnp.float32)

    if kernel_rows > 0:
        if tail_elems:
            pos_main = pos[:kernel_elems]
            neg_main = neg[:kernel_elems]
        else:
            pos_main, neg_main = pos, neg
        pos_main = pos_main.reshape(kernel_rows, LANES)
        neg_main = neg_main.reshape(kernel_rows, LANES)

        # Big blocks for HBM roofline; keep >= 4 grid steps on large inputs so
        # v7x's two TensorCores both stream (grid axis is "parallel"), without
        # letting blocks drop below the ~1 MiB roofline plateau.
        block_rows = min(kernel_rows, MAX_BLOCK_ROWS)
        if kernel_rows >= 4 * MIN_SPLIT_BLOCK_ROWS:
            quarter = ((kernel_rows // 4) // SUBLANES) * SUBLANES
            block_rows = min(block_rows, max(MIN_SPLIT_BLOCK_ROWS, quarter))
        grid = pl.cdiv(kernel_rows, block_rows)
        last_valid_rows = kernel_rows - (grid - 1) * block_rows

        kernel = _make_bpr_kernel(block_rows, grid, last_valid_rows)

        partials = pl.pallas_call(
            kernel,
            out_shape=jax.ShapeDtypeStruct((grid * SUBLANES, LANES), jnp.float32),
            grid_spec=pl.GridSpec(
                grid=(grid,),
                in_specs=[
                    pl.BlockSpec((block_rows, LANES), lambda i: (i, 0)),
                    pl.BlockSpec((block_rows, LANES), lambda i: (i, 0)),
                ],
                out_specs=pl.BlockSpec((SUBLANES, LANES), lambda i: (i, 0)),
            ),
            compiler_params=pltpu.CompilerParams(
                # Each step writes its own (8,128) partial -> truly parallel.
                dimension_semantics=("parallel",),
                # 2 inputs x 2 pipeline buffers x 2 MiB = 8 MiB + temporaries:
                # raise scoped VMEM past v5e's 16 MiB default; fine on v6e/v7x.
                vmem_limit_bytes=32 * 1024 * 1024,
            ),
        )(pos_main, neg_main)
        total = total + jnp.sum(partials)

    if tail_elems > 0:
        # Remainder smaller than one (8,128) tile: negligible, pure JAX.
        pos_t = pos[kernel_elems:].astype(jnp.float32)
        neg_t = neg[kernel_elems:].astype(jnp.float32)
        total = total + jnp.sum(-jax.nn.sigmoid(pos_t - neg_t))

    return total / n_valid if size_average else total


if __name__ == "__main__":
    key = jax.random.PRNGKey(0)
    k1, k2, k3, k4, k5, k6 = jax.random.split(key, 6)

    def _ref(p, n):
        l = -jax.nn.sigmoid(jnp.squeeze(p - n))
        return jnp.sum(l), jnp.mean(l)

    # Case A: 1024-aligned batch -> zero-copy path, single-block kernel.
    posA = jax.random.normal(k1, (4096, 1), dtype=jnp.float32) + 0.5
    negA = jax.random.normal(k2, (4096, 1), dtype=jnp.float32)
    sA = bpr_loss(posA, negA, size_average=False)
    mA = bpr_loss(posA, negA, size_average=True)

    # Case B: tiny batch (< one (8,128) tile) -> pure-JAX remainder path.
    posB = jax.random.normal(k3, (300, 1), dtype=jnp.float32) + 0.5
    negB = jax.random.normal(k4, (300, 1), dtype=jnp.float32)
    sB = bpr_loss(posB, negB, size_average=False)
    mB = bpr_loss(posB, negB, size_average=True)

    # Case C: larger misaligned batch -> multi-step grid with a masked ragged
    # last block plus a small JAX tail (still only ~2.4 MB per input).
    posC = jax.random.normal(k5, (600_000, 1), dtype=jnp.float32) + 0.5
    negC = jax.random.normal(k6, (600_000, 1), dtype=jnp.float32)
    sC = bpr_loss(posC, negC, size_average=False)
    mC = bpr_loss(posC, negC, size_average=True)

    jax.block_until_ready((sA, mA, sB, mB, sC, mC))

    for s, m, p, n in ((sA, mA, posA, negA),
                       (sB, mB, posB, negB),
                       (sC, mC, posC, negC)):
        rs, rm = _ref(p, n)
        assert jnp.allclose(s, rs, rtol=1e-4, atol=1e-2), (s, rs)
        assert jnp.allclose(m, rm, rtol=1e-4, atol=1e-5), (m, rm)

    print("KERNEL_OK")
</pallas_src>

<mosaic_0001>
module attributes {stable_mosaic.version = 11 : i64} {
  func.func @kernel(%arg0: i32, %arg1: memref<32x128xf32, #tpu.memory_space<vmem>>, %arg2: memref<32x128xf32, #tpu.memory_space<vmem>>, %arg3: memref<8x128xf32, #tpu.memory_space<vmem>>) attributes {dimension_semantics = [#tpu.dimension_semantics<parallel>], iteration_bounds = array<i64: 1>, scalar_prefetch = 0 : i64, scratch_operands = 0 : i64, tpu.core_type = #tpu.core_type<tc>, window_params = [{transform_indices = @transform_0, window_bounds = array<i64: 32, 128>}, {transform_indices = @transform_1, window_bounds = array<i64: 32, 128>}, {transform_indices = @transform_2, window_bounds = array<i64: 8, 128>}]} {
    %c0 = arith.constant 0 : index
    %c0_0 = arith.constant 0 : index
    %0 = vector.load %arg1[%c0, %c0_0] : memref<32x128xf32, #tpu.memory_space<vmem>>, vector<32x128xf32>
    %c0_1 = arith.constant 0 : index
    %c0_2 = arith.constant 0 : index
    %1 = vector.load %arg2[%c0_1, %c0_2] : memref<32x128xf32, #tpu.memory_space<vmem>>, vector<32x128xf32>
    %2 = arith.subf %0, %1 : vector<32x128xf32>
    %3 = arith.negf %2 : vector<32x128xf32>
    %4 = math.exp %3 : vector<32x128xf32>
    %cst = arith.constant 1.000000e+00 : f32
    %5 = vector.broadcast %cst : f32 to vector<32x128xf32>
    %6 = arith.addf %5, %4 : vector<32x128xf32>
    %7 = arith.divf %5, %6 : vector<32x128xf32>
    %cst_3 = arith.constant 0.000000e+00 : f32
    %8 = vector.broadcast %cst_3 : f32 to vector<32x128xf32>
    %9 = arith.subf %8, %7 : vector<32x128xf32>
    %10 = vector.shape_cast %9 : vector<32x128xf32> to vector<4x8x128xf32>
    %cst_4 = arith.constant dense<0.000000e+00> : vector<8x128xf32>
    %11 = vector.multi_reduction <add>, %10, %cst_4 [0] : vector<4x8x128xf32> to vector<8x128xf32>
    %c0_5 = arith.constant 0 : index
    %c0_6 = arith.constant 0 : index
    %12 = vector.load %arg3[%c0_5, %c0_6] : memref<8x128xf32, #tpu.memory_space<vmem>>, vector<8x128xf32>
    tpu.vector_store %arg3[%c0_5, %c0_6], %11 {strides = array<i32>} : memref<8x128xf32, #tpu.memory_space<vmem>>, vector<8x128xf32>,
    return
  }
  func.func @transform_0(%arg0: i32) -> (i32, i32) {
    %c0_i32 = arith.constant 0 : i32
    %c0_i32_0 = arith.constant 0 : i32
    return %arg0, %c0_i32 : i32, i32
  }
  func.func @transform_1(%arg0: i32) -> (i32, i32) {
    %c0_i32 = arith.constant 0 : i32
    %c0_i32_0 = arith.constant 0 : i32
    return %arg0, %c0_i32 : i32, i32
  }
  func.func @transform_2(%arg0: i32) -> (i32, i32) {
    %c0_i32 = arith.constant 0 : i32
    %c0_i32_0 = arith.constant 0 : i32
    return %arg0, %c0_i32 : i32, i32
  }
}

</mosaic_0001>

<bundles_post_ra>
// kernel: tpu_custom_call.1
= control target key start
LH: loop header
LB: loop body
LE: loop exit
PB: predicated region body
PF: predicated region fallthrough
CT: control target
= control target key end

     0   :  { %7 = vsyncpa [#allocation3], 0  ;;  %s318_s0 = inlined_call_operand.hbm [shape: f32[32,128], index: 0, kind: input, shape index: {}]   ;;  %s319_s1 = inlined_call_operand.hbm [shape: f32[32,128], index: 1, kind: input, shape index: {}]   ;;  %s320_s2 = inlined_call_operand.hbm [shape: f32[8,128], index: 2, kind: output, shape index: {}]  }
   0x1   :  { %8 = vsyncpa [#allocation6], 0 }
   0x2   :  { %9 = vsyncpa [#allocation4], 0  ;;  %s14_s11 = sshll.u32 %s318_s0, 4  ;;  %s261_s12 = smov [#allocation2]   ;;  %s15_s11 = int_to_ptr.hbm [resolvable:$true] %s14_s11 }
   0x3   :  { %s16_s13 = sshll.u32 %s261_s12, 4  ;;  %s27_s16 = sshll.u32 %s319_s1, 4  ;;  %s17_s13 = int_to_ptr.vmem [resolvable:$true] %s16_s13  ;;  %s28_s16 = int_to_ptr.hbm [resolvable:$true] %s27_s16 }
   0x4   :  { %s262_s17 = smov 128   ;;  %s263_s18 = smov 8  }
   0x5   :  { %22 = dma.hbm_to_vmem [thread:$0]  %s15_s11, 512, %s17_s13, [#allocation3], %s262_s17, %s262_s17, %s263_s18  }
   0x6   :  { %s264_s19 = smov [#allocation5]  }
   0x7   :  { %s29_s20 = sshll.u32 %s264_s19, 4  ;;  %s30_s20 = int_to_ptr.vmem [resolvable:$true] %s29_s20 }
   0x8   :  { %35 = dma.hbm_to_vmem [thread:$0]  %s28_s16, 512, %s30_s20, [#allocation6], %s262_s17, %s262_s17, %s263_s18  }
   0x9   :  { %255 = dma.done.wait [#allocation3], 512  }
   0xa   :  { %256 = vsyncadd [#allocation3], 4294966784 }
   0xb   :  { %257 = dma.done.wait [#allocation6], 512  }
   0xc   :  { %258 = vsyncadd [#allocation6], 4294966784  ;;  %v44_v0 = vld [vmem:[#allocation2] sm:$0xff]  ;;  %v45_v1 = vld [vmem:[#allocation2 + $0x8] sm:$0xff]  ;;  %s265_s0 = smov [#allocation7]   ;;  %s147_s23 = sshll.u32 %s320_s2, 4  ;;  %s148_s23 = int_to_ptr.hbm [resolvable:$true] %s147_s23 }
   0xd   :  { %v46_v2 = vld [vmem:[#allocation2 + $0x10] sm:$0xff]  ;;  %v47_v3 = vld [vmem:[#allocation2 + $0x18] sm:$0xff]  ;;  %v48_v4 = vld [vmem:[#allocation5] sm:$0xff]  ;;  %s145_s1 = sshll.u32 %s265_s0, 4  ;;  %s146_s1 = int_to_ptr.vmem [resolvable:$true] %s145_s1 }
   0xe   :  { %v49_v5 = vld [vmem:[#allocation5 + $0x8] sm:$0xff]  ;;  %v50_v6 = vld [vmem:[#allocation5 + $0x10] sm:$0xff]  ;;  %v51_v7 = vld [vmem:[#allocation5 + $0x18] sm:$0xff]  ;;  %v52_v8 = vsub.f32 %v44_v0, %v48_v4 }
   0xf   :  { %v53_v9 = vsub.f32 %v45_v1, %v49_v5  ;;  %v54_v10 = vsub.f32 %v46_v2, %v50_v6  ;;  %v55_v11 = vsub.f32 %v47_v3, %v51_v7 }
  0x10   :  { %v158_v12 = vmul.f32 -1.442695, %v52_v8 }
  0x11   :  { %v159_v13 = vmul.f32 -1.442695, %v53_v9  ;;  %v160_v14 = vmul.f32 -1.442695, %v54_v10  ;;  %v161_v15 = vmul.f32 -1.442695, %v55_v11 }
  0x12   :  { %167 = vpow2.f32 %v158_v12 }
  0x13   :  { %169 = vpow2.f32 %v159_v13 }
  0x14   :  { %171 = vpow2.f32 %v160_v14 }
  0x15   :  { %173 = vpow2.f32 %v161_v15 }
  0x18   :  { %v168_v16 = vpop.eup %167 }
  0x19   :  { %v170_v17 = vpop.eup %169  ;;  %v68_v18 = vadd.f32 1.0, %v168_v16 }
  0x1a   :  { %v172_v19 = vpop.eup %171  ;;  %v69_v20 = vadd.f32 1.0, %v170_v17 }
  0x1b   :  { %v174_v21 = vpop.eup %173  ;;  %v70_v22 = vadd.f32 1.0, %v172_v19  ;;  %175 = vrcp.f32 %v68_v18  ;;  %v81_v24 = vand.u32 2147483647, %v68_v18  ;;  %v83_v25 = vand.u32 2147483648, %v68_v18 }
  0x1c   :  { %v71_v23 = vadd.f32 1.0, %v174_v21  ;;  %177 = vrcp.f32 %v69_v20  ;;  %v98_v27 = vand.u32 2147483648, %v69_v20  ;;  %vm77_vm0 = vweird.f32 %v68_v18 }
  0x1d   :  { %179 = vrcp.f32 %v70_v22  ;;  %vm287_vm1 = vcmp.eq.f32.partialorder %v81_v24, 8.507059e+37  ;;  %vm92_vm2 = vweird.f32 %v69_v20  ;;  %v84_v32 = vor.u32 1.1754944e-38, %v83_v25 }
  0x1e   :  { %181 = vrcp.f32 %v71_v23  ;;  %v96_v34 = vand.u32 2147483647, %v69_v20  ;;  %vm107_vm3 = vweird.f32 %v70_v22  ;;  %v111_v37 = vand.u32 2147483647, %v70_v22 }
  0x1f   :  { %v99_v40 = vor.u32 1.1754944e-38, %v98_v27  ;;  %v113_v41 = vand.u32 2147483648, %v70_v22  ;;  %vm122_vm8 = vweird.f32 %v71_v23  ;;  %v126_v47 = vand.u32 2147483647, %v71_v23 }
  0x20   :  { %v128_v48 = vand.u32 2147483648, %v71_v23  ;;  %vm97_vm11 = vcmp.eq.f32.partialorder %v96_v34, 8.507059e+37  ;;  %vm112_vm13 = vcmp.eq.f32.partialorder %v111_v37, 8.507059e+37 }
  0x21   :  { %v176_v26 = vpop.eup %175  ;;  %v114_v55 = vor.u32 1.1754944e-38, %v113_v41  ;;  %vm127_vm15 = vcmp.eq.f32.partialorder %v126_v47, 8.507059e+37 }
  0x22   :  { %v178_v28 = vpop.eup %177  ;;  %v73_v29 = vmul.f32 %v176_v26, %v68_v18  ;;  %vm78_vm4 = vweird.f32 %v176_v26  ;;  %v129_v61 = vor.u32 1.1754944e-38, %v128_v48 }
  0x23   :  { %v180_v31 = vpop.eup %179  ;;  %v88_v33 = vmul.f32 %v178_v28, %v69_v20  ;;  %vm93_vm5 = vweird.f32 %v178_v28  ;;  %vm292_vm7 = vmor %vm77_vm0, %vm78_vm4 }
  0x24   :  { %v74_v35 = vsub.f32 1.0, %v73_v29  ;;  %v103_v36 = vmul.f32 %v180_v31, %v70_v22  ;;  %v182_v38 = vpop.eup %181  ;;  %vm108_vm6 = vweird.f32 %v180_v31  ;;  %vm297_vm9 = vmor %vm92_vm2, %vm93_vm5 }
  0x25   :  { %v89_v39 = vsub.f32 1.0, %v88_v33  ;;  %v118_v44 = vmul.f32 %v182_v38, %v71_v23  ;;  %vm123_vm10 = vweird.f32 %v182_v38  ;;  %vm302_vm12 = vmor %vm107_vm3, %vm108_vm6 }
  0x26   :  { %v75_v42 = vmul.f32 %v176_v26, %v74_v35  ;;  %v104_v43 = vsub.f32 1.0, %v103_v36  ;;  %vm124_vm14 = vmor %vm122_vm8, %vm123_vm10 }
  0x27   :  { %v90_v46 = vmul.f32 %v178_v28, %v89_v39  ;;  %v119_v52 = vsub.f32 1.0, %v118_v44 }
  0x28   :  { %v76_v49 = vadd.f32 %v176_v26, %v75_v42  ;;  %v105_v51 = vmul.f32 %v180_v31, %v104_v43 }
  0x29   :  { %v91_v53 = vadd.f32 %v178_v28, %v90_v46  ;;  %v120_v58 = vmul.f32 %v182_v38, %v119_v52 }
  0x2a   :  { %v80_v56 = vsel %vm292_vm7, %v176_v26, %v76_v49  ;;  %v106_v57 = vadd.f32 %v180_v31, %v105_v51 }
  0x2b   :  { %v85_v59 = vsel %vm287_vm1, %v84_v32, %v80_v56  ;;  %v95_v60 = vsel %vm297_vm9, %v178_v28, %v91_v53  ;;  %v121_v0 = vadd.f32 %v182_v38, %v120_v58 }
  0x2c   :  { %v100_v62 = vsel %vm97_vm11, %v99_v40, %v95_v60  ;;  %v110_v63 = vsel %vm302_vm12, %v180_v31, %v106_v57  ;;  %v132_v1 = vsub.f32 0.0, %v85_v59 }
  0x2d   :  { %v115_v2 = vsel %vm112_vm13, %v114_v55, %v110_v63  ;;  %v133_v3 = vsub.f32 0.0, %v100_v62  ;;  %v125_v4 = vsel %vm124_vm14, %v182_v38, %v121_v0 }
  0x2e   :  { %v134_v5 = vsub.f32 0.0, %v115_v2  ;;  %v130_v6 = vsel %vm127_vm15, %v129_v61, %v125_v4 }
  0x2f   :  { %v136_v7 = vadd.f32 %v133_v3, %v132_v1  ;;  %v135_v8 = vsub.f32 0.0, %v130_v6 }
  0x31   :  { %v137_v9 = vadd.f32 %v136_v7, %v134_v5 }
  0x33   :  { %v138_v10 = vadd.f32 %v137_v9, %v135_v8 }
  0x35   :  { %139 = vst [vmem:[#allocation7] sm:$0xff] %v138_v10 }
  0x36   :  { %150 = dma.vmem_to_hbm [thread:$0]  %s146_s1, 128, %s148_s23, [#allocation4]  }
  0x37   :  { %259 = dma.done.wait [#allocation4], 128  }
  0x38   :  { %260 = vsyncadd [#allocation4], 4294967168 }
  0x39   :  { %155 = vsyncpa [#allocation3], 1 }
  0x3a   :  { %156 = vsyncpa [#allocation6], 1 }
  0x3b   :  { %157 = vsyncpa [#allocation4], 1 }

</bundles_post_ra>
